<compile_context>
chip_gen: v7x
topology: tpu7x:2x2x1
jax: 0.10.0
libtpu: 0.0.40
codegen_flags: <defaults>
</compile_context>

<pallas_src>
import jax
import jax.numpy as jnp
from jax.experimental import pallas as pl
from jax.experimental.pallas import tpu as pltpu


def l2norm_kernel(x_ref, w_ref, o_ref):
    # x_ref: (1, C, T)   w_ref: (1, C, 1)   o_ref: (1, C, T)
    x = x_ref[...].astype(jnp.float32)
    w = w_ref[...].astype(jnp.float32)
    # Sum of squares over channels (f32 accumulation), then one rsqrt per
    # spatial column (EUP) instead of sqrt + per-element divide (VALU).
    sumsq = jnp.sum(x * x, axis=1, keepdims=True)        # (1, 1, T)
    inv = jax.lax.rsqrt(sumsq)                           # (1, 1, T)
    o_ref[...] = (x * inv * w).astype(o_ref.dtype)


def _round_up(a, b):
    return (a + b - 1) // b * b


def l2norm(x_nchw, weight, *, tile=512, interpret=False):
    """x_nchw: (N, C, H, W), weight: (1, C, 1, 1) -> (N, C, H, W)."""
    N, C, H, W = x_nchw.shape
    HW = H * W

    # Lane-dense spatial tile: multiple of 128, capped at `tile`.
    T = min(_round_up(tile, 128), _round_up(HW, 128))
    HW_pad = _round_up(HW, T)
    num_t = HW_pad // T

    x3 = x_nchw.reshape(N, C, HW)
    if HW_pad != HW:
        # Zero-pad spatial axis so every block/store is full-width and
        # unmasked; padded columns produce garbage that is sliced off below.
        x3 = jnp.pad(x3, ((0, 0), (0, 0), (0, HW_pad - HW)))
    w3 = weight.reshape(1, C, 1)

    out3 = pl.pallas_call(
        l2norm_kernel,
        out_shape=jax.ShapeDtypeStruct((N, C, HW_pad), x_nchw.dtype),
        grid_spec=pltpu.PrefetchScalarGridSpec(
            num_scalar_prefetch=0,
            grid=(N, num_t),
            in_specs=[
                pl.BlockSpec((1, C, T), lambda n, t: (n, 0, t)),
                pl.BlockSpec((1, C, 1), lambda n, t: (0, 0, 0)),  # resident
            ],
            out_specs=pl.BlockSpec((1, C, T), lambda n, t: (n, 0, t)),
        ),
        compiler_params=pltpu.CompilerParams(
            # Channel reduction lives entirely inside a block, so both grid
            # axes are independent -> megacore-shardable on v7x.
            dimension_semantics=("parallel", "parallel"),
        ),
        interpret=interpret,
    )(x3, w3)

    if HW_pad != HW:
        out3 = out3[:, :, :HW]
    return out3.reshape(N, C, H, W)


def l2norm_ref(x, weight):
    norm = jnp.sqrt(jnp.sum(x * x, axis=1, keepdims=True))
    return x / norm * weight


if __name__ == "__main__":
    # Small shapes consistent with the module: batch=2, channels=4, spatial=16x16
    N, C, H, W = 2, 4, 16, 16
    scale = 20.0  # typical SSD L2Norm init scale

    key = jax.random.PRNGKey(0)
    x = jax.random.normal(key, (N, C, H, W), dtype=jnp.float32)

    # Deterministic parameter init (nn.init.constant_(weight, scale))
    weight = jnp.full((1, C, 1, 1), scale, dtype=jnp.float32)

    out = l2norm(x, weight)
    out = jax.block_until_ready(out)

    ref = l2norm_ref(x, weight)
    assert out.shape == (N, C, H, W)
    # rsqrt-based path vs sqrt+divide reference: allow a slightly looser tol.
    assert jnp.allclose(out, ref, atol=1e-4, rtol=1e-4), "mismatch vs reference"

    print("KERNEL_OK")
</pallas_src>

<mosaic_0001>
module attributes {stable_mosaic.version = 11 : i64} {
  func.func @l2norm_kernel(%arg0: i32, %arg1: i32, %arg2: memref<1x4x256xf32, #tpu.memory_space<vmem>>, %arg3: memref<1x4x1xf32, #tpu.memory_space<vmem>>, %arg4: memref<1x4x256xf32, #tpu.memory_space<vmem>>) attributes {dimension_semantics = [#tpu.dimension_semantics<parallel>, #tpu.dimension_semantics<parallel>], iteration_bounds = array<i64: 2, 1>, scalar_prefetch = 0 : i64, scratch_operands = 0 : i64, tpu.core_type = #tpu.core_type<tc>, window_params = [{transform_indices = @transform_0, window_bounds = array<i64: 1, 4, 256>}, {pipeline_mode = #tpu.pipeline_mode<synchronous>, transform_indices = @transform_1, window_bounds = array<i64: 1, 4, 1>}, {transform_indices = @transform_2, window_bounds = array<i64: 1, 4, 256>}]} {
    %c0 = arith.constant 0 : index
    %c0_0 = arith.constant 0 : index
    %c0_1 = arith.constant 0 : index
    %0 = vector.load %arg2[%c0, %c0_0, %c0_1] : memref<1x4x256xf32, #tpu.memory_space<vmem>>, vector<1x4x256xf32>
    %c0_2 = arith.constant 0 : index
    %c0_3 = arith.constant 0 : index
    %c0_4 = arith.constant 0 : index
    %1 = vector.load %arg3[%c0_2, %c0_3, %c0_4] : memref<1x4x1xf32, #tpu.memory_space<vmem>>, vector<1x4x1xf32>
    %2 = arith.mulf %0, %0 : vector<1x4x256xf32>
    %cst = arith.constant dense<0.000000e+00> : vector<1x256xf32>
    %3 = vector.multi_reduction <add>, %2, %cst [1] : vector<1x4x256xf32> to vector<1x256xf32>
    %4 = vector.shape_cast %3 : vector<1x256xf32> to vector<1x1x256xf32>
    %5 = math.rsqrt %4 : vector<1x1x256xf32>
    %6 = vector.broadcast %5 : vector<1x1x256xf32> to vector<1x4x256xf32>
    %7 = arith.mulf %0, %6 : vector<1x4x256xf32>
    %8 = vector.broadcast %1 : vector<1x4x1xf32> to vector<1x4x256xf32>
    %9 = arith.mulf %7, %8 : vector<1x4x256xf32>
    %c0_5 = arith.constant 0 : index
    %c0_6 = arith.constant 0 : index
    %c0_7 = arith.constant 0 : index
    %10 = vector.load %arg4[%c0_5, %c0_6, %c0_7] : memref<1x4x256xf32, #tpu.memory_space<vmem>>, vector<1x4x256xf32>
    tpu.vector_store %arg4[%c0_5, %c0_6, %c0_7], %9 {strides = array<i32>} : memref<1x4x256xf32, #tpu.memory_space<vmem>>, vector<1x4x256xf32>,
    return
  }
  func.func @transform_0(%arg0: i32, %arg1: i32) -> (i32, i32, i32) {
    %c0_i32 = arith.constant 0 : i32
    %c0_i32_0 = arith.constant 0 : i32
    return %arg0, %c0_i32, %arg1 : i32, i32, i32
  }
  func.func @transform_1(%arg0: i32, %arg1: i32) -> (i32, i32, i32) {
    %c0_i32 = arith.constant 0 : i32
    %c0_i32_0 = arith.constant 0 : i32
    %c0_i32_1 = arith.constant 0 : i32
    %c0_i32_2 = arith.constant 0 : i32
    return %c0_i32, %c0_i32_0, %c0_i32_1 : i32, i32, i32
  }
  func.func @transform_2(%arg0: i32, %arg1: i32) -> (i32, i32, i32) {
    %c0_i32 = arith.constant 0 : i32
    %c0_i32_0 = arith.constant 0 : i32
    return %arg0, %c0_i32, %arg1 : i32, i32, i32
  }
}

</mosaic_0001>

<bundles_post_ra>
// kernel: tpu_custom_call.1
= control target key start
LH: loop header
LB: loop body
LE: loop exit
PB: predicated region body
PF: predicated region fallthrough
CT: control target
= control target key end

     0   :  { %7 = vsyncpa [#allocation3], 0  ;;  %s721_s0 = inlined_call_operand.hbm [shape: f32[2,4,256], index: 0, kind: input, shape index: {}]   ;;  %s722_s1 = inlined_call_operand.vmem [shape: f32[1,4,1], index: 1, kind: input, shape index: {}]   ;;  %s723_s2 = inlined_call_operand.hbm [shape: f32[2,4,256], index: 2, kind: output, shape index: {}]  }
   0x1   :  { %9 = vsyncpa [#allocation3 + $0x1], 0 }
   0x2   :  { %10 = vsyncpa [#allocation4], 0 }
   0x3   :  { %12 = vsyncpa [#allocation4 + $0x1], 0  ;;  %s542_s9 = smov 0   ;;  %s544_s10 = smov 0  }
   0x4   :  { %s546_s11 = smov 0   ;;  %s548_s12 = smov 0  }
   0x5   :  { %s550_s13 = smov 0   ;;  %s552_s14 = smov 0  }
   0x6 LB: > { %s323_s15 = sadd.s32 4294967295, %s521_s14   ;;  %s324_s16 = sadd.s32 4294967294, %s521_s14   ;;  %s521_s14 = sphi %s552_s14, %s18_s14   ;;  %s517_s13 = sphi %s550_s13, %s739_s13   ;;  %s513_s12 = sphi %s548_s12, %s738_s12   ;;  %s509_s11 = sphi %s546_s11, %s737_s11   ;;  %s505_s10 = sphi %s544_s10, %s736_s10   ;;  %s501_s9 = sphi %s542_s9, %s735_s9  }
   0x7   : > { %s30_s17 = sadd.s32 1, %s517_s13  ;;  %s39_s18 = sadd.s32 1, %s509_s11 }
   0x8   : > { %p32_p0 = scmp.ge.s32.totalorder %s30_s17, 2  ;;  %p46_p1 = scmp.ne.s32.totalorder %s509_s11, %s505_s10 }
   0x9   : > { %p47_p2 = scmp.eq.s32.totalorder %s521_s14, 0  ;;  %p52_p3 = scmp.ne.s32.totalorder %s505_s10, %s501_s9 }
   0xa   : > { %s741_s17 = smov (%p32_p0, %s30_s17), 0  ;;  %p53_p5 = scmp.eq.s32.totalorder %s323_s15, 0 }
   0xb   : > { %p583_p4 = por %p47_p2, %p46_p1  ;;  %s34_s20 = ssub.s32 %s517_s13, %s741_s17 }
   0xc   : > { %p99_p6 = scmp.eq.s32.totalorder %s323_s15, 1  ;;  %p37_p7 = scmp.eq.s32.totalorder %s34_s20, 0 }
   0xd   : > { %p589_p8 = por %p53_p5, %p52_p3  ;;  %p105_p10 = scmp.eq.s32.totalorder %s324_s16, 1 }
   0xe   : > { %p593_p9 = por %p99_p6, %p46_p1  ;;  %p352_p13 = scmp.lt.s32.totalorder %s521_s14, 2 }
   0xf   : > { %s598_s23 = scalar_select %p37_p7, %s509_s11, %s39_s18  }
  0x10   : > { %s727_s22 = scalar_select %p593_p9, 1, 0 }
  0x11   : > { %p600_p11 = por %p105_p10, %p52_p3  ;;  %s128_s25 = sand.u32 1, %s509_s11  }
  0x12   : > { %s327_s26 = sshll.u32 %s128_s25, 3  ;;  %s338_s27 = sshll.u32 %s517_s13, 7 }
  0x13   : > { %s728_s24 = scalar_select %p600_p11, 1, 0 }
  0x14   : > { %s611_s30 = scalar_lea.hbm %s721_s0, %s338_s27  ;;  %s132_s3 = scalar_lea.vmem [#allocation2], %s327_s26 }
  0x15   : > { %s142_s4 = sshll.u32 %s132_s3, 4  ;;  %p617_p0 = pnand %p352_p13, %p583_p4  ;;  %s613_s4 = int_to_ptr.vmem [resolvable:$true] %s142_s4 }
  0x16   : > { %s129_s6 = scalar_lea.sflag [#allocation3], %s128_s25  ;;  %s409_s7 = scalar_lea.hbm %s611_s30, 128 }
  0x17   : > { %p410_p3 = scmp.ne.s32.totalorder %s611_s30, %s409_s7  ;;  %p411_p5 = pneg %p617_p0 }
  0x18   : > { %s414_s16 = scalar_lea.hbm %s721_s0, 256  ;;  %p415_p4 = scmp.lt.u32.totalorder %s611_s30, %s721_s0 }
  0x19   : > { %p412_p6 = pnand %p411_p5, %p410_p3  ;;  %p416_p10 = scmp.lt.u32.totalorder %s414_s16, %s409_s7 }
  0x1a   : > { %p418_p12 = scmp.lt.u32.totalorder %s409_s7, %s611_s30 }
  0x1b   : > { %p413_p7 = pneg %p412_p6  ;;  %p417_p13 = por %p416_p10, %p415_p4 }
  0x1d   : > { %p419_p1 = por %p418_p12, %p417_p13 }
  0x1f   : > { %p420_p2 = pnand %p419_p1, %p413_p7 }
  0x21   : > { %423 = shalt.err (!%p420_p2)
}
  0x22   : > { %s424_s20 = scalar_lea.vmem %s613_s4, 128  ;;  %s523_s25 = smov [#allocation2]  }
  0x23   : > { %p425_p3 = scmp.ne.s32.totalorder %s613_s4, %s424_s20  ;;  %s429_s26 = sshll.u32 %s523_s25, 4  ;;  %s430_s26 = int_to_ptr.vmem [resolvable:$false] %s429_s26 }
  0x24   : > { %s431_s27 = scalar_lea.vmem %s430_s26, 256  ;;  %p432_p9 = scmp.lt.s32.totalorder %s613_s4, %s430_s26 }
  0x25   : > { %p427_p6 = pnand %p425_p3, %p411_p5  ;;  %p433_p4 = scmp.lt.s32.totalorder %s431_s27, %s424_s20 }
  0x27   : > { %p428_p11 = pneg %p427_p6  ;;  %p434_p10 = por %p433_p4, %p432_p9 }
  0x29   : > { %p435_p12 = pnand %p434_p10, %p428_p11 }
  0x2b   : > { %438 = shalt.err (!%p435_p12)
}
  0x2c   : > { %347 = dma.hbm_to_vmem [thread:$0]  (!%p617_p0), %s611_s30, 128, %s613_s4, %s129_s6  }
  0x2d   : > { %p730_p1 = scmp.lt.s32.totalorder %s521_s14, 3  ;;  %p731_p2 = scmp.ge.s32.totalorder %s521_s14, 1 }
  0x2f   : > { %p148_p5 = pnand %p731_p2, %p730_p1 }
  0x30   : > { %s653_s28 = sand.u32 (!%p148_p5), 1, %s505_s10  }
  0x31   : > { %151 = sbr.rel (%p148_p5) target bundleno = 205 (0xcd), region = 28  ;;  %s331_s29 = sshll.u32 (!%p148_p5), %s653_s28, 3 }
  0x32   : > { %s154_s3 = scalar_lea.sflag (!%p148_p5), [#allocation3], %s653_s28  ;;  %s157_s5 = scalar_lea.vmem (!%p148_p5), [#allocation2], %s331_s29 }
  0x38   : > { %492 = dma.done.wait (%p589_p8), %s154_s3, 128  }
  0x39   : > { %494 = vsyncadd (%p589_p8), %s154_s3, 4294967168  ;;  %v524_v0 = vmov 0   ;;  %v181_v1 = vld [vmem:[%s722_s1] sm:$0xf]  ;;  %vm186_vm0 = vcmask 1043456   ;;  %v215_v21 = vlaneseq  ;;  %s339_s21 = sshll.u32 %s513_s12, 7 }
  0x3a   : > { %404 = vset.pattern.permute.xlu0 %v524_v0  ;;  %v180_v2 = vld [vmem:[%s157_s5] sm:$0xff]  ;;  %v525_v19 = vmov 839922192   ;;  %s177_s6 = scalar_lea.vmem [#allocation5], %s331_s29  ;;  %s672_s16 = scalar_lea.hbm %s723_s2, %s339_s21 }
  0x3b   : > { %210 = vperm.xlu0 %404, %v181_v1   ;;  %v182_v3 = vmul.f32 %v180_v2, %v180_v2  ;;  %v213_v20 = vunpack.c.l.s4 %v525_v19  ;;  %v216_v25 = vshrl.u32 %v215_v21, 7  ;;  %s239_s7 = sshll.u32 %s177_s6, 4  ;;  %s223_s18 = scalar_lea.sflag [#allocation4], %s653_s28  ;;  %s674_s7 = int_to_ptr.vmem [resolvable:$true] %s239_s7 }
  0x3c   : > { %s439_s19 = scalar_lea.vmem %s674_s7, 128  ;;  %p732_p9 = scmp.ne.s32.totalorder %s727_s22, 0 }
  0x3d   : > { %v184_v4 = vcombine.high %v182_v3, %v182_v3  ;;  %v187_v5 = vsel %vm186_vm0, %v182_v3, 0.0  ;;  %v214_v24 = vunpack.c.0.s8 %v213_v20  ;;  %p440_p8 = scmp.ne.s32.totalorder %s674_s7, %s439_s19  ;;  %s526_s12 = smov [#allocation5]  }
  0x3e   : > { %v188_v7 = vrot.slane %v187_v5, 4  ;;  %s443_s20 = sshll.u32 %s526_s12, 4  ;;  %s444_s20 = int_to_ptr.vmem [resolvable:$false] %s443_s20 }
  0x3f   : > { %v194_v6 = vsel %vm186_vm0, %v184_v4, 0.0  ;;  %v217_v27 = vsub.s32 %v214_v24, %v216_v25  ;;  %p441_p11 = pnand %p440_p8, %p732_p9  ;;  %s445_s25 = scalar_lea.vmem %s444_s20, 256 }
  0x40   : > { %v195_v8 = vrot.slane %v194_v6, 4  ;;  %v189_v9 = vadd.f32 %v188_v7, %v187_v5  ;;  %p446_p7 = scmp.lt.s32.totalorder %s674_s7, %s444_s20  ;;  %p447_p13 = scmp.lt.s32.totalorder %s445_s25, %s439_s19 }
  0x41   : > { %p442_p0 = pneg %p441_p11 }
  0x42   : > { %v196_v10 = vadd.f32 %v195_v8, %v194_v6  ;;  %v190_v11 = vrot.slane %v189_v9, 2  ;;  %p448_p3 = por %p447_p13, %p446_p7 }
  0x44   : > { %v197_v12 = vrot.slane %v196_v10, 2  ;;  %v191_v13 = vadd.f32 %v190_v11, %v189_v9  ;;  %p449_p6 = pnand %p448_p3, %p442_p0 }
  0x46   : > { %v198_v14 = vadd.f32 %v197_v12, %v196_v10  ;;  %v192_v15 = vrot.slane %v191_v13, 1 }
  0x48   : > { %v199_v16 = vrot.slane %v198_v14, 1  ;;  %v193_v17 = vadd.f32 %v192_v15, %v191_v13 }
  0x4a   : > { %v200_v18 = vadd.f32 %v199_v16, %v198_v14  ;;  %405 = vrsqrt.f32 %v193_v17 }
  0x4c   : > { %407 = vrsqrt.f32 %v200_v18 }
  0x54   : > { %v406_v22 = vpop.eup %405 }
  0x56   : > { %v408_v23 = vpop.eup %407 }
  0x57   : > { %v205_v26 = vcombine.low %v406_v22, %v408_v23 }
  0x59   : > { %v207_v28 = vmul.f32 %v205_v26, %v180_v2 }
  0xba   : > { %v211_v29 = vpop.permute.xlu0 %210 }
  0xbb   : > { %v218_v30 = vrot.slane %v211_v29, %v217_v27 }
  0xbd   : > { %v220_v31 = vmul.f32 %v218_v30, %v207_v28 }
  0xbf   : > { %221 = vst [vmem:[%s177_s6] sm:$0xff] %v220_v31 }
  0xc0   : > { %452 = shalt.err (!%p449_p6)
}
  0xc1   : > { %s453_s26 = scalar_lea.hbm %s672_s16, 128  ;;  %s457_s29 = scalar_lea.hbm %s723_s2, 256 }
  0xc2   : > { %p454_p4 = scmp.ne.s32.totalorder %s672_s16, %s453_s26  ;;  %p458_p1 = scmp.lt.u32.totalorder %s672_s16, %s723_s2 }
  0xc3   : > { %p459_p2 = scmp.lt.u32.totalorder %s457_s29, %s453_s26  ;;  %p461_p8 = scmp.lt.u32.totalorder %s453_s26, %s672_s16 }
  0xc4   : > { %p455_p10 = pnand %p454_p4, %p732_p9 }
  0xc5   : > { %p460_p5 = por %p459_p2, %p458_p1 }
  0xc6   : > { %p456_p12 = pneg %p455_p10 }
  0xc7   : > { %p462_p11 = por %p461_p8, %p460_p5 }
  0xc9   : > { %p463_p0 = pnand %p462_p11, %p456_p12 }
  0xcb   : > { %466 = shalt.err (!%p463_p0)
}
  0xcc   : > { %342 = dma.vmem_to_hbm [thread:$0]  (%p732_p9), %s674_s7, 128, %s672_s16, %s223_s18  }
  0xcd PF: > { %s251_s30 = sand.u32 1, %s501_s9   ;;  %p733_p7 = scmp.ne.s32.totalorder %s728_s24, 0 }
  0xce   : > { %p734_p13 = scmp.ge.s32.totalorder %s521_s14, 2  ;;  %s252_s4 = scalar_lea.sflag [#allocation4], %s251_s30 }
  0xd0   : > { %p349_p3 = pnand %p734_p13, %p733_p7 }
  0xd2   : > { %496 = dma.done.wait (!%p349_p3), %s252_s4, 128  }
  0xd3   : > { %498 = vsyncadd (!%p349_p3), %s252_s4, 4294967168  ;;  %s18_s14 = sadd.s32 1, %s521_s14   ;;  %s735_s9 = smov %s505_s10 }
  0xd4   : > { %p15_p6 = scmp.ge.s32.totalorder %s18_s14, 4   ;;  %s736_s10 = smov %s509_s11 }
  0xd5   : > { %s737_s11 = smov %s598_s23  ;;  %s738_s12 = smov %s517_s13 }
  0xd6   : > { %s739_s13 = smov %s741_s17  ;;  %17 = sbr.rel (!%p15_p6) target bundleno = 6 (0x6), region = 73 }
  0xdd   :  { %257 = vsyncpa [#allocation3], 1 }
  0xde   :  { %259 = vsyncpa [#allocation3 + $0x1], 1 }
  0xdf   :  { %260 = vsyncpa [#allocation4], 1 }
  0xe0   :  { %262 = vsyncpa [#allocation4 + $0x1], 1 }

</bundles_post_ra>
